<compile_context>
chip_gen: v7x
topology: tpu7x:2x2x1
jax: 0.10.0
libtpu: 0.0.40
codegen_flags: <defaults>
</compile_context>

<pallas_src>
import jax
import jax.numpy as jnp
from jax.experimental import pallas as pl
from jax.experimental.pallas import tpu as pltpu


def _clip_loss_kernel(scale_ref, img_ref, txt_ref, col_ref, part_ref):
    # scale_ref: SMEM (1, 1) f32
    # img_ref:   VMEM (tB, D)    streamed row tile of image features
    # txt_ref:   VMEM (B,  D)    full text features, resident across the grid
    # col_ref:   VMEM (1, 8, B)  per-tile per-column logsumexp (sublane-bcast)
    # part_ref:  VMEM (1, 8, 128) per-tile scalar partial sum (broadcast)
    tB = img_ref.shape[0]
    B = txt_ref.shape[0]

    scale = scale_ref[0, 0]

    # Apply logit_scale on the small (tB, D) tile rather than the (tB, B)
    # logits strip (fewer VPU multiplies when B > D).  Cast back to the input
    # dtype so bf16 inputs keep the fast MXU path.
    img_scaled = (img_ref[...].astype(jnp.float32) * scale).astype(img_ref.dtype)

    # logits strip = rows [i*tB, (i+1)*tB) of logit_scale * img @ txt.T.
    # Contract last dims of both operands -> no txt transpose / relayout.
    strip = jax.lax.dot_general(
        img_scaled, txt_ref[...],
        dimension_numbers=(((1,), (1,)), ((), ())),
        preferred_element_type=jnp.float32)                    # (tB, B) f32

    # --- image-side CE: row-wise logsumexp (lane-axis reductions) ---
    m_r = jnp.max(strip, axis=1, keepdims=True)                # (tB, 1)
    lse_r = jnp.log(jnp.sum(jnp.exp(strip - m_r), axis=1,
                            keepdims=True)) + m_r              # (tB, 1)
    sum_lse_img = jnp.sum(lse_r)

    # --- diagonal ("correct pair") logits from features: O(tB * D) ---
    i = pl.program_id(0)
    row0 = pl.multiple_of(i * tB, tB)
    txt_tile = txt_ref[pl.ds(row0, tB), :]                     # (tB, D)
    diag_partial = jnp.sum(img_scaled.astype(jnp.float32)
                           * txt_tile.astype(jnp.float32))

    # --- text-side CE: per-tile column logsumexp; combined across tiles in a
    #     tiny JAX epilogue so the grid axis stays fully parallel. ---
    m_c = jnp.max(strip, axis=0, keepdims=True)                # (1, B)
    plse_c = jnp.log(jnp.sum(jnp.exp(strip - m_c), axis=0,
                             keepdims=True)) + m_c             # (1, B)

    col_ref[0] = jnp.broadcast_to(plse_c, (8, B))
    partial = sum_lse_img - 2.0 * diag_partial
    part_ref[0] = jnp.full((8, 128), partial, dtype=jnp.float32)


def _pick_row_tile(B, target):
    t = min(target, B)
    while t > 1:
        if B % t == 0 and (t % 8 == 0 or t == B):
            return t
        t -= 1
    return B


def clip_loss(image_features, text_features, logit_scale, *, block_rows=256):
    """image_features, text_features: (B, D); logit_scale: scalar. Returns scalar loss."""
    B, D = image_features.shape
    assert text_features.shape == (B, D)
    tB = _pick_row_tile(B, block_rows)
    T = B // tB

    scale = jnp.asarray(logit_scale, jnp.float32).reshape(1, 1)

    itemsize = jnp.dtype(image_features.dtype).itemsize
    cost = pl.CostEstimate(
        flops=int(2 * B * B * D),
        transcendentals=int(2 * B * B),
        bytes_accessed=int(2 * B * D * itemsize + T * (8 * B + 8 * 128) * 4),
    )

    # Rough VMEM budget: resident txt (x2 buffers) + streamed img tile (x2)
    # + logits strip & exp temporaries + small outputs, with headroom.
    vmem_est = (2 * B * D * itemsize
                + 2 * tB * D * itemsize
                + 4 * tB * B * 4
                + 2 * 8 * B * 4 + 2 * 8 * 128 * 4)
    vmem_limit = int(min(64 * 1024 * 1024,
                         max(int(1.5 * vmem_est), 16 * 1024 * 1024)))

    col_plse, partials = pl.pallas_call(
        _clip_loss_kernel,
        out_shape=(jax.ShapeDtypeStruct((T, 8, B), jnp.float32),
                   jax.ShapeDtypeStruct((T, 8, 128), jnp.float32)),
        grid_spec=pltpu.PrefetchScalarGridSpec(
            num_scalar_prefetch=0,
            grid=(T,),
            in_specs=[
                pl.BlockSpec(memory_space=pltpu.SMEM),            # logit_scale
                pl.BlockSpec((tB, D), lambda i: (i, 0)),          # image rows (streamed)
                pl.BlockSpec((B, D), lambda i: (0, 0)),           # text feats (resident)
            ],
            out_specs=[
                pl.BlockSpec((1, 8, B), lambda i: (i, 0, 0)),     # per-tile column LSE
                pl.BlockSpec((1, 8, 128), lambda i: (i, 0, 0)),   # per-tile scalar partial
            ],
        ),
        compiler_params=pltpu.CompilerParams(
            dimension_semantics=("parallel",),
            vmem_limit_bytes=vmem_limit),
        cost_estimate=cost,
    )(scale, image_features, text_features)

    # Tiny epilogue (O(T*B)): stable logsumexp over the tile axis for the
    # column (text-side) statistics, then assemble the scalar loss.
    plse = col_plse[:, 0, :]                                     # (T, B)
    m = jnp.max(plse, axis=0)
    lse_c = jnp.log(jnp.sum(jnp.exp(plse - m[None, :]), axis=0)) + m   # (B,)
    total = jnp.sum(partials[:, 0, 0]) + jnp.sum(lse_c)
    return total / (2.0 * B)


def clip_loss_ref(image_features, text_features, logit_scale):
    logits_i = logit_scale * image_features @ text_features.T
    logits_t = logit_scale * text_features @ image_features.T
    labels = jnp.arange(logits_i.shape[0])

    def ce(logits, labels):
        lse = jax.scipy.special.logsumexp(logits, axis=1)
        correct = logits[jnp.arange(logits.shape[0]), labels]
        return jnp.mean(lse - correct)

    return 0.5 * (ce(logits_i, labels) + ce(logits_t, labels))


if __name__ == "__main__":
    key = jax.random.PRNGKey(0)
    k1, k2 = jax.random.split(key)
    B, D = 32, 64
    img = jax.random.normal(k1, (B, D), dtype=jnp.float32)
    txt = jax.random.normal(k2, (B, D), dtype=jnp.float32)
    # Normalize like CLIP (keeps logits in a sane range).
    img = img / jnp.linalg.norm(img, axis=-1, keepdims=True)
    txt = txt / jnp.linalg.norm(txt, axis=-1, keepdims=True)
    logit_scale = jnp.float32(20.0)

    # block_rows=8 -> 4 row tiles: exercises the tiled / multi-step grid path.
    out = clip_loss(img, txt, logit_scale, block_rows=8)
    out = jax.block_until_ready(out)

    ref = clip_loss_ref(img, txt, logit_scale)
    assert jnp.allclose(out, ref, rtol=1e-4, atol=1e-4), (out, ref)
    print("KERNEL_OK")
</pallas_src>

<mosaic_0001>
module attributes {stable_mosaic.version = 11 : i64} {
  func.func @_clip_loss_kernel(%arg0: i32, %arg1: memref<1x1xf32, #tpu.memory_space<smem>>, %arg2: memref<8x64xf32, #tpu.memory_space<vmem>>, %arg3: memref<32x64xf32, #tpu.memory_space<vmem>>, %arg4: memref<1x8x32xf32, #tpu.memory_space<vmem>>, %arg5: memref<1x8x128xf32, #tpu.memory_space<vmem>>) attributes {dimension_semantics = [#tpu.dimension_semantics<parallel>], iteration_bounds = array<i64: 4>, scalar_prefetch = 0 : i64, scratch_operands = 0 : i64, tpu.core_type = #tpu.core_type<tc>, window_params = [{transform_indices = @transform_0, window_bounds = array<i64: 1, 1>}, {transform_indices = @transform_1, window_bounds = array<i64: 8, 64>}, {pipeline_mode = #tpu.pipeline_mode<synchronous>, transform_indices = @transform_2, window_bounds = array<i64: 32, 64>}, {transform_indices = @transform_3, window_bounds = array<i64: 1, 8, 32>}, {transform_indices = @transform_4, window_bounds = array<i64: 1, 8, 128>}]} {
    %c0 = arith.constant 0 : index
    %c0_0 = arith.constant 0 : index
    %0 = memref.load %arg1[%c0, %c0_0] : memref<1x1xf32, #tpu.memory_space<smem>>
    %c0_1 = arith.constant 0 : index
    %c0_2 = arith.constant 0 : index
    %1 = vector.load %arg2[%c0_1, %c0_2] : memref<8x64xf32, #tpu.memory_space<vmem>>, vector<8x64xf32>
    %2 = vector.broadcast %0 : f32 to vector<8x64xf32>
    %3 = arith.mulf %1, %2 : vector<8x64xf32>
    %c0_3 = arith.constant 0 : index
    %c0_4 = arith.constant 0 : index
    %4 = vector.load %arg3[%c0_3, %c0_4] : memref<32x64xf32, #tpu.memory_space<vmem>>, vector<32x64xf32>
    %cst = arith.constant dense<0.000000e+00> : vector<8x32xf32>
    %5 = tpu.matmul %3, %4, %cst {dimension_numbers = #tpu.dot_dimension_numbers<[1], [1], [0], [0], [0, 0, 1, 0], [], []>} : vector<8x64xf32>, vector<32x64xf32>, vector<8x32xf32> -> vector<8x32xf32>
    %cst_5 = arith.constant dense<0xFF800000> : vector<8xf32>
    %6 = vector.multi_reduction <maximumf>, %5, %cst_5 [1] : vector<8x32xf32> to vector<8xf32>
    %7 = vector.shape_cast %6 : vector<8xf32> to vector<8x1xf32>
    %8 = vector.broadcast %7 : vector<8x1xf32> to vector<8x32xf32>
    %9 = arith.subf %5, %8 : vector<8x32xf32>
    %10 = math.exp %9 : vector<8x32xf32>
    %cst_6 = arith.constant dense<0.000000e+00> : vector<8xf32>
    %11 = vector.multi_reduction <add>, %10, %cst_6 [1] : vector<8x32xf32> to vector<8xf32>
    %12 = vector.shape_cast %11 : vector<8xf32> to vector<8x1xf32>
    %13 = math.log %12 : vector<8x1xf32>
    %14 = arith.addf %13, %7 : vector<8x1xf32>
    %15 = vector.shape_cast %14 : vector<8x1xf32> to vector<1x8x1xf32>
    %cst_7 = arith.constant dense<0.000000e+00> : vector<1xf32>
    %16 = vector.multi_reduction <add>, %15, %cst_7 [1, 2] : vector<1x8x1xf32> to vector<1xf32>
    %17 = vector.shape_cast %16 : vector<1xf32> to vector<1x1x1xf32>
    %18 = vector.extract %17[0, 0, 0] : f32 from vector<1x1x1xf32>
    %c8_i32 = arith.constant 8 : i32
    %19 = arith.muli %arg0, %c8_i32 : i32
    %20 = tpu.assume_multiple %19, 8 : i32
    %21 = arith.index_cast %20 : i32 to index
    %c0_8 = arith.constant 0 : index
    %22 = vector.load %arg3[%21, %c0_8] : memref<32x64xf32, #tpu.memory_space<vmem>>, vector<8x64xf32>
    %23 = arith.mulf %3, %22 : vector<8x64xf32>
    %24 = vector.shape_cast %23 : vector<8x64xf32> to vector<1x8x64xf32>
    %cst_9 = arith.constant dense<0.000000e+00> : vector<1xf32>
    %25 = vector.multi_reduction <add>, %24, %cst_9 [1, 2] : vector<1x8x64xf32> to vector<1xf32>
    %26 = vector.shape_cast %25 : vector<1xf32> to vector<1x1x1xf32>
    %27 = vector.extract %26[0, 0, 0] : f32 from vector<1x1x1xf32>
    %cst_10 = arith.constant dense<0xFF800000> : vector<32xf32>
    %28 = vector.multi_reduction <maximumf>, %5, %cst_10 [0] : vector<8x32xf32> to vector<32xf32>
    %29 = vector.shape_cast %28 : vector<32xf32> to vector<1x32xf32>
    %30 = vector.broadcast %29 : vector<1x32xf32> to vector<8x32xf32>
    %31 = arith.subf %5, %30 : vector<8x32xf32>
    %32 = math.exp %31 : vector<8x32xf32>
    %cst_11 = arith.constant dense<0.000000e+00> : vector<32xf32>
    %33 = vector.multi_reduction <add>, %32, %cst_11 [0] : vector<8x32xf32> to vector<32xf32>
    %34 = vector.shape_cast %33 : vector<32xf32> to vector<1x32xf32>
    %35 = math.log %34 : vector<1x32xf32>
    %36 = arith.addf %35, %29 : vector<1x32xf32>
    %37 = vector.shape_cast %36 : vector<1x32xf32> to vector<1x32xf32>
    %38 = vector.broadcast %37 : vector<1x32xf32> to vector<8x32xf32>
    %c0_12 = arith.constant 0 : index
    %c0_13 = arith.constant 0 : index
    %c0_14 = arith.constant 0 : index
    %39 = vector.load %arg4[%c0_12, %c0_13, %c0_14] : memref<1x8x32xf32, #tpu.memory_space<vmem>>, vector<1x8x32xf32>
    %40 = vector.shape_cast %39 : vector<1x8x32xf32> to vector<8x32xf32>
    %41 = vector.shape_cast %38 : vector<8x32xf32> to vector<1x8x32xf32>
    tpu.vector_store %arg4[%c0_12, %c0_13, %c0_14], %41 {strides = array<i32>} : memref<1x8x32xf32, #tpu.memory_space<vmem>>, vector<1x8x32xf32>,
    %cst_15 = arith.constant 2.000000e+00 : f32
    %42 = arith.mulf %cst_15, %27 : f32
    %43 = arith.subf %18, %42 : f32
    %44 = vector.broadcast %43 : f32 to vector<8x128xf32>
    %c0_16 = arith.constant 0 : index
    %c0_17 = arith.constant 0 : index
    %c0_18 = arith.constant 0 : index
    %45 = vector.load %arg5[%c0_16, %c0_17, %c0_18] : memref<1x8x128xf32, #tpu.memory_space<vmem>>, vector<1x8x128xf32>
    %46 = vector.shape_cast %45 : vector<1x8x128xf32> to vector<8x128xf32>
    %47 = vector.shape_cast %44 : vector<8x128xf32> to vector<1x8x128xf32>
    tpu.vector_store %arg5[%c0_16, %c0_17, %c0_18], %47 {strides = array<i32>} : memref<1x8x128xf32, #tpu.memory_space<vmem>>, vector<1x8x128xf32>,
    return
  }
  func.func @transform_0(%arg0: i32) -> (i32, i32) {
    %c0_i32 = arith.constant 0 : i32
    %c0_i32_0 = arith.constant 0 : i32
    %c0_i32_1 = arith.constant 0 : i32
    return %c0_i32, %c0_i32_0 : i32, i32
  }
  func.func @transform_1(%arg0: i32) -> (i32, i32) {
    %c0_i32 = arith.constant 0 : i32
    %c0_i32_0 = arith.constant 0 : i32
    return %arg0, %c0_i32 : i32, i32
  }
  func.func @transform_2(%arg0: i32) -> (i32, i32) {
    %c0_i32 = arith.constant 0 : i32
    %c0_i32_0 = arith.constant 0 : i32
    %c0_i32_1 = arith.constant 0 : i32
    return %c0_i32, %c0_i32_0 : i32, i32
  }
  func.func @transform_3(%arg0: i32) -> (i32, i32, i32) {
    %c0_i32 = arith.constant 0 : i32
    %c0_i32_0 = arith.constant 0 : i32
    %c0_i32_1 = arith.constant 0 : i32
    return %arg0, %c0_i32, %c0_i32_0 : i32, i32, i32
  }
  func.func @transform_4(%arg0: i32) -> (i32, i32, i32) {
    %c0_i32 = arith.constant 0 : i32
    %c0_i32_0 = arith.constant 0 : i32
    %c0_i32_1 = arith.constant 0 : i32
    return %arg0, %c0_i32, %c0_i32_0 : i32, i32, i32
  }
}

</mosaic_0001>

<bundles_post_ra>
// kernel: tpu_custom_call.1
= control target key start
LH: loop header
LB: loop body
LE: loop exit
PB: predicated region body
PF: predicated region fallthrough
CT: control target
= control target key end

     0   :  { %s1095_s0 = inlined_call_operand.<no memory space> [shape: f32[1,1], index: 0, kind: input, shape index: {}]   ;;  %s1096_s1 = inlined_call_operand.hbm [shape: f32[32,64], index: 1, kind: input, shape index: {}]   ;;  %s1097_s2 = inlined_call_operand.hbm [shape: f32[32,64], index: 2, kind: input, shape index: {}]   ;;  %s1098_s3 = inlined_call_operand.hbm [shape: f32[4,8,32], index: 3, kind: output, shape index: {0}]   ;;  %s1099_s4 = inlined_call_operand.hbm [shape: f32[4,8,128], index: 4, kind: output, shape index: {1}]  }
   0x1   :  { %10 = sst [smem:[#allocation2]] %s1095_s0 }
   0x2   :  { %11 = vsyncpa [#allocation4], 0 }
   0x3   :  { %13 = vsyncpa [#allocation4 + $0x1], 0 }
   0x4   :  { %14 = vsyncpa [#allocation7], 0 }
   0x5   :  { %15 = vsyncpa [#allocation5], 0 }
   0x6   :  { %17 = vsyncpa [#allocation5 + $0x1], 0 }
   0x7   :  { %18 = vsyncpa [#allocation10], 0 }
   0x8   :  { %20 = vsyncpa [#allocation10 + $0x1], 0  ;;  %s867_s17 = smov 0   ;;  %s869_s18 = smov 0  }
   0x9   :  { %s871_s19 = smov 0   ;;  %s873_s20 = smov 0  }
   0xa LB: > { %s888_s0 = sadd.s32 4294967295, %s828_s20   ;;  %s542_s21 = sadd.s32 4294967294, %s828_s20   ;;  %s828_s20 = sphi %s873_s20, %s1118_s20   ;;  %s824_s19 = sphi %s871_s19, %s1117_s19   ;;  %s820_s18 = sphi %s869_s18, %s1116_s18   ;;  %s816_s17 = sphi %s867_s17, %s1115_s17  }
   0xb   : > { %p67_p0 = scmp.ne.s32.totalorder %s820_s18, %s816_s17  ;;  %p1100_p1 = scmp.eq.s32.totalorder %s888_s0, 0 }
   0xc   : > { %p118_p3 = scmp.eq.s32.totalorder %s542_s21, 3  ;;  %p543_p5 = scmp.ge.s32.totalorder %s828_s20, 1 }
   0xd   : > { %p897_p4 = por %p1100_p1, %p67_p0  ;;  %p151_p7 = scmp.lt.s32.totalorder %s828_s20, 5 }
   0xe   : > { %p902_p6 = por %p118_p3, %p67_p0  ;;  %s830_s25 = smov [#allocation6]  }
   0xf   : > { %s1103_s22 = scalar_select %p897_p4, 1, 0 }
  0x10   : > { %s1104_s23 = scalar_select %p902_p6, 1, 0 }
  0x11   : > { %p907_p8 = pnand %p543_p5, %p151_p7  ;;  %s166_s26 = sshll.u32 %s830_s25, 4  ;;  %s167_s26 = int_to_ptr.vmem [resolvable:$true] %s166_s26 }
  0x12   : > { %s920_s28 = sadd.s32 1, %s828_s20   ;;  %s54_s29 = sadd.s32 1, %s824_s19 }
  0x13   : > { %s1105_s24 = scalar_select %p907_p8, 1, 0 }
  0x14   : > { %p603_p9 = pneg %p907_p8  ;;  %s51_s30 = ssub.s32 %s828_s20, %s920_s28 }
  0x15   : > { %s668_s7 = scalar_lea.hbm %s1097_s2, 512 }
  0x16   : > { %p915_p10 = pnand %p603_p9, %p1100_p1  ;;  %p669_p11 = scmp.ne.s32.totalorder %s1097_s2, %s668_s7 }
  0x17   : > { %p675_p3 = scmp.lt.u32.totalorder %s668_s7, %s1097_s2 }
  0x18   : > { %p670_p12 = pneg %p915_p10 }
  0x1a   : > { %p671_p13 = pnand %p670_p12, %p669_p11 }
  0x1c   : > { %p672_p0 = pneg %p671_p13 }
  0x1e   : > { %p677_p5 = pnand %p675_p3, %p672_p0 }
  0x20   : > { %680 = shalt.err (!%p677_p5)
}
  0x21   : > { %s681_s12 = scalar_lea.vmem %s167_s26, 512  ;;  %p689_p2 = scmp.lt.s32.totalorder %s167_s26, %s167_s26 }
  0x22   : > { %p682_p7 = scmp.ne.s32.totalorder %s167_s26, %s681_s12  ;;  %p690_p6 = scmp.lt.s32.totalorder %s681_s12, %s681_s12 }
  0x24   : > { %p684_p9 = pnand %p682_p7, %p670_p12  ;;  %p691_p4 = por %p690_p6, %p689_p2 }
  0x26   : > { %p685_p1 = pneg %p684_p9 }
  0x28   : > { %p692_p8 = pnand %p691_p4, %p685_p1 }
  0x2a   : > { %695 = shalt.err (!%p692_p8)
}
  0x2b   : > { %s831_s13 = smov 128   ;;  %s832_s14 = smov 8  }
  0x2c   : > { %606 = dma.hbm_to_vmem [thread:$0]  (!%p915_p10), %s1097_s2, 512, %s167_s26, [#allocation7], %s831_s13, %s831_s13, %s832_s14  }
  0x2d   : > { %p52_p11 = scmp.eq.s32.totalorder %s51_s30, 0  ;;  %p61_p2 = scmp.ne.s32.totalorder %s824_s19, %s820_s18 }
  0x2e   : > { %p62_p1 = scmp.eq.s32.totalorder %s828_s20, 0  ;;  %p619_p4 = scmp.lt.s32.totalorder %s828_s20, 4 }
  0x2f   : > { %s946_s21 = scalar_select %p52_p11, %s824_s19, %s54_s29  }
  0x30   : > { %p63_p6 = por %p62_p1, %p61_p2  ;;  %p1107_p8 = scmp.eq.s32.totalorder %s888_s0, 3 }
  0x31   : > { %s180_s5 = sand.u32 1, %s824_s19   ;;  %s547_s6 = sshll.u32 %s828_s20, 7 }
  0x32   : > { %p950_p12 = por %p1107_p8, %p61_p2  ;;  %s546_s7 = sshll.u32 %s180_s5, 3 }
  0x33   : > { %s959_s9 = scalar_lea.hbm %s1096_s1, %s547_s6  ;;  %s184_s26 = scalar_lea.vmem [#allocation3], %s546_s7 }
  0x34   : > { %s191_s29 = sshll.u32 %s184_s26, 4  ;;  %p961_p10 = pnand %p619_p4, %p63_p6  ;;  %s965_s29 = int_to_ptr.vmem [resolvable:$true] %s191_s29 }
  0x35   : > { %s181_s10 = scalar_lea.sflag [#allocation4], %s180_s5  ;;  %s696_s11 = scalar_lea.hbm %s959_s9, 128 }
  0x36   : > { %p697_p13 = scmp.ne.s32.totalorder %s959_s9, %s696_s11  ;;  %p698_p0 = pneg %p961_p10 }
  0x37   : > { %s701_s14 = scalar_lea.hbm %s1096_s1, 512  ;;  %p702_p7 = scmp.lt.u32.totalorder %s959_s9, %s1096_s1 }
  0x38   : > { %p699_p3 = pnand %p698_p0, %p697_p13  ;;  %p703_p9 = scmp.lt.u32.totalorder %s701_s14, %s696_s11 }
  0x39   : > { %p705_p2 = scmp.lt.u32.totalorder %s696_s11, %s959_s9 }
  0x3a   : > { %p700_p5 = pneg %p699_p3  ;;  %p704_p11 = por %p703_p9, %p702_p7 }
  0x3c   : > { %p706_p1 = por %p705_p2, %p704_p11 }
  0x3e   : > { %p707_p4 = pnand %p706_p1, %p700_p5 }
  0x40   : > { %710 = shalt.err (!%p707_p4)
}
  0x41   : > { %s711_s5 = scalar_lea.vmem %s965_s29, 128  ;;  %s833_s6 = smov [#allocation3]  }
  0x42   : > { %p712_p6 = scmp.ne.s32.totalorder %s965_s29, %s711_s5  ;;  %s716_s7 = sshll.u32 %s833_s6, 4  ;;  %s717_s7 = int_to_ptr.vmem [resolvable:$false] %s716_s7 }
  0x43   : > { %s718_s27 = scalar_lea.vmem %s717_s7, 256  ;;  %p719_p3 = scmp.lt.s32.totalorder %s965_s29, %s717_s7 }
  0x44   : > { %p714_p8 = pnand %p712_p6, %p698_p0  ;;  %p720_p7 = scmp.lt.s32.totalorder %s718_s27, %s711_s5 }
  0x46   : > { %p715_p13 = pneg %p714_p8  ;;  %p721_p9 = por %p720_p7, %p719_p3 }
  0x48   : > { %p722_p11 = pnand %p721_p9, %p715_p13 }
  0x4a   : > { %725 = shalt.err (!%p722_p11)
}
  0x4b   : > { %610 = dma.hbm_to_vmem [thread:$0]  (!%p961_p10), %s959_s9, 128, %s965_s29, %s181_s10  }
  0x4c   : > { %p1110_p5 = scmp.ne.s32.totalorder %s1105_s24, 0 }
  0x4d   : > { %s995_s8 = sand.u32 (!%p1110_p5), 1, %s820_s18   ;;  %p1111_p0 = scmp.ne.s32.totalorder (!%p1110_p5), %s1103_s22, 0 }
  0x4e   : > { %200 = sbr.rel (%p1110_p5) target bundleno = 863 (0x35f), region = 32  ;;  %s998_s26 = sshll.u32 (!%p1110_p5), %s995_s8, 3 }
  0x4f   : > { %s203_s11 = scalar_lea.sflag (!%p1110_p5), [#allocation4], %s995_s8  ;;  %s206_s12 = scalar_lea.vmem (!%p1110_p5), [#allocation3], %s998_s26 }
  0x55   : > { %799 = dma.done.wait (%p1111_p0), %s203_s11, 128  }
  0x56   : > { %801 = vsyncadd (%p1111_p0), %s203_s11, 4294967168  ;;  %p1112_p10 = scmp.eq.s32.totalorder %s888_s0, 0 }
  0x58   : > { %803 = dma.done.wait (%p1112_p10), [#allocation7], 512   ;;  %p1113_p2 = pmov %p1112_p10 }
  0x59   : > { %v834_v0 = vmov 0.0|0.0   ;;  %vm835_vm0 = vmmov 0   ;;  %v836_v1 = vmov 0.0   ;;  %vm248_vm1 = vcmask 523264   ;;  %v244_v2 = vld [vmem:[#allocation6] sm:$0xff]  ;;  %v245_v3 = vld [vmem:[#allocation6 + $0x8] sm:$0xff] }
  0x5a   : > { %805 = vsyncadd (%p1113_p2), [#allocation7], 4294966784  ;;  %581 = vmatprep.subr.bf16.mxu0 %v834_v0  ;;  %578 = vmatprep.mubr.msk.f32.mxu0 %vm835_vm0, %v836_v1  ;;  %v582_v4 = vpack.c.bf16 %v245_v3, %v244_v2  ;;  %s240_s22 = sld [smem:[#allocation2]]  ;;  %v246_v5 = vld [vmem:[#allocation6 + $0x10] sm:$0xff]  ;;  %v247_v6 = vld [vmem:[#allocation6 + $0x18] sm:$0xff]  ;;  %vm334_vm3 = vcmask 261120  }
  0x5b   : > { %vm583_vm2 = vmpackc.low %vm248_vm1, %vm248_vm1  ;;  %v586_v7 = vpack.c.bf16 %v247_v6, %v246_v5  ;;  %v241_v8 = vld [vmem:[%s206_s12] sm:$0xff]  ;;  %s232_s24 = scalar_lea.vmem [#allocation8], %s998_s26  ;;  %s558_s9 = sshll.u32 %s888_s0, 3  ;;  %vm347_vm4 = vcmask 7168  }
  0x5c   : > { %584 = vmatpush3.bf16.xpose.msk.msra.mxu0 %vm583_vm2, %v582_v4  ;;  %s359_s29 = scalar_lea.vmem [#allocation6], %s558_s9  ;;  %s561_s30 = sshll.u32 %s888_s0, 7 }
  0x5d   : > { %585 = vmatprep.subr.bf16.mxu0 %v834_v0  ;;  %v360_v40 = vld [vmem:[%s359_s29] sm:$0xff]  ;;  %s415_s10 = sshll.u32 %s232_s24, 4  ;;  %s1026_s15 = scalar_lea.hbm %s1098_s3, %s561_s30  ;;  %s416_s10 = int_to_ptr.vmem [resolvable:$true] %s415_s10 }
  0x5e   : > { %s397_s16 = scalar_lea.sflag [#allocation5], %s995_s8  ;;  %s726_s5 = scalar_lea.vmem %s416_s10, 128 }
  0x5f   : > { %p727_p1 = scmp.ne.s32.totalorder %s416_s10, %s726_s5  ;;  %s837_s6 = smov [#allocation8]  }
  0x60   : > { %v242_v9 = vstv %s240_s22  ;;  %s730_s7 = sshll.u32 %s837_s6, 4  ;;  %s731_s7 = int_to_ptr.vmem [resolvable:$false] %s730_s7 }
  0x61   : > { %v243_v10 = vmul.f32 %v242_v9, %v241_v8  ;;  %p728_p4 = pnand %p727_p1, %p950_p12  ;;  %s732_s27 = scalar_lea.vmem %s731_s7, 256 }
  0x62   : > { %p733_p8 = scmp.lt.s32.totalorder %s416_s10, %s731_s7  ;;  %p734_p13 = scmp.lt.s32.totalorder %s732_s27, %s726_s5 }
  0x63   : > { %v361_v43 = vmul.f32 %v360_v40, %v243_v10  ;;  %p729_p6 = pneg %p728_p4 }
  0x64   : > { %588 = vmatpush3.bf16.xpose.msk.msra.mxu0 %vm583_vm2, %v586_v7  ;;  %p735_p3 = por %p734_p13, %p733_p8 }
  0x65   : > { %v362_v45 = vsel %vm248_vm1, %v361_v43, 0.0 }
  0x66   : > { %p736_p7 = pnand %p735_p3, %p729_p6 }
  0x6b   : > { %579 = vmatmul.mubr.msk.f32.vlgmr.msra.gmra.mrb[0].mxu0 %vm248_vm1, %v243_v10 }
 0x13e   : > { %v330_v11 = vpop.f32.mrb[0].mxu0 }
 0x13f   : > { %v580_v12 = vpop.f32.mrb[1].mxu0  ;;  %v335_v13 = vsel %vm334_vm3, %v330_v11, -inf }
 0x140   : > { %336 = vmax.xlane.f32.xlu0 %v335_v13  ;;  %v372_v14 = vrot.slane %v335_v13, 4 }
 0x142   : > { %v373_v15 = vmax.f32 %v335_v13, %v372_v14 }
 0x144   : > { %v374_v16 = vrot.slane %v373_v15, 2 }
 0x146   : > { %v375_v17 = vmax.f32 %v373_v15, %v374_v16 }
 0x148   : > { %v376_v18 = vrot.slane %v375_v17, 1 }
 0x14a   : > { %v377_v19 = vmax.f32 %v375_v17, %v376_v18 }
 0x14c   : > { %v378_v20 = vsub.f32 %v330_v11, %v377_v19 }
 0x14e   : > { %v379_v21 = vmul.f32 1.442695, %v378_v20 }
 0x150   : > { %660 = vpow2.f32 %v379_v21 }
 0x15a   : > { %v661_v22 = vpop.eup %660 }
 0x15b   : > { %v381_v23 = vsel %vm334_vm3, %v661_v22, 0.0 }
 0x15c   : > { %v382_v24 = vrot.slane %v381_v23, 4 }
 0x15e   : > { %v383_v25 = vadd.f32 %v382_v24, %v381_v23 }
 0x160   : > { %v384_v26 = vrot.slane %v383_v25, 2 }
 0x162   : > { %v385_v27 = vadd.f32 %v384_v26, %v383_v25 }
 0x164   : > { %v386_v28 = vrot.slane %v385_v27, 1 }
 0x166   : > { %v387_v29 = vadd.f32 %v386_v28, %v385_v27 }
 0x168   : > { %662 = vlog2.f32 %v387_v29 }
 0x172   : > { %v663_v30 = vpop.eup %662 }
 0x173   : > { %v389_v31 = vmul.f32 0.6931472, %v663_v30 }
 0x175   : > { %v390_v32 = vadd.f32 %v389_v31, %v377_v19 }
 0x177   : > { %391 = vst.msk [vmem:[%s232_s24] sm:$0xff] %vm334_vm3, %v390_v32 }
 0x1cd   : > { %v337_v33 = vpop.xlane.xlu0 %336 }
 0x1ce   : > { %v338_v34 = vsub.f32 %v330_v11, %v337_v33 }
 0x1d0   : > { %v339_v35 = vmul.f32 1.442695, %v338_v34 }
 0x1d2   : > { %664 = vpow2.f32 %v339_v35 }
 0x1dc   : > { %v665_v36 = vpop.eup %664 }
 0x1dd   : > { %v341_v37 = vsel %vm334_vm3, %v665_v36, 0.0 }
 0x1de   : > { %342 = vadd.xlane.f32.xlu0 %v341_v37 }
 0x26b   : > { %v343_v38 = vpop.xlane.xlu0 %342 }
 0x26c   : > { %666 = vlog2.f32 %v343_v38 }
 0x276   : > { %v667_v39 = vpop.eup %666 }
 0x277   : > { %v345_v41 = vmul.f32 0.6931472, %v667_v39 }
 0x279   : > { %v346_v42 = vadd.f32 %v345_v41, %v337_v33 }
 0x27b   : > { %v348_v44 = vsel %vm347_vm4, %v346_v42, 0.0 }
 0x27c   : > { %349 = vadd.xlane.f32.xlu1 %v348_v44 }
 0x280   : > { %363 = vadd.xlane.f32.xlu1 %v362_v45 }
 0x281   : > { %739 = shalt.err (!%p736_p7)
}
 0x282   : > { %s740_s11 = scalar_lea.hbm %s1026_s15, 128  ;;  %s744_s24 = scalar_lea.hbm %s1098_s3, 512 }
 0x283   : > { %p741_p9 = scmp.ne.s32.totalorder %s1026_s15, %s740_s11  ;;  %p745_p0 = scmp.lt.u32.totalorder %s1026_s15, %s1098_s3 }
 0x284   : > { %p746_p10 = scmp.lt.u32.totalorder %s744_s24, %s740_s11  ;;  %p748_p1 = scmp.lt.u32.totalorder %s740_s11, %s1026_s15 }
 0x285   : > { %p742_p11 = pnand %p741_p9, %p950_p12 }
 0x286   : > { %p747_p2 = por %p746_p10, %p745_p0 }
 0x287   : > { %p743_p5 = pneg %p742_p11 }
 0x288   : > { %p749_p4 = por %p748_p1, %p747_p2 }
 0x28a   : > { %p750_p6 = pnand %p749_p4, %p743_p5 }
 0x28c   : > { %753 = shalt.err (!%p750_p6)
}
 0x28d   : > { %599 = dma.vmem_to_hbm [thread:$0]  (%p950_p12), %s416_s10, 128, %s1026_s15, %s397_s16  }
 0x28e   : > { %s239_s15 = scalar_lea.vmem [#allocation9], %s998_s26  ;;  %s1052_s27 = scalar_lea.hbm %s1099_s4, %s561_s30 }
 0x28f   : > { %s428_s16 = sshll.u32 %s239_s15, 4  ;;  %s402_s11 = scalar_lea.sflag [#allocation10], %s995_s8  ;;  %s1054_s16 = int_to_ptr.vmem [resolvable:$true] %s428_s16 }
 0x290   : > { %s754_s12 = scalar_lea.vmem %s1054_s16, 128  ;;  %s838_s26 = smov [#allocation9]  }
 0x291   : > { %p755_p8 = scmp.ne.s32.totalorder %s1054_s16, %s754_s12  ;;  %s758_s0 = sshll.u32 %s838_s26, 4  ;;  %s759_s0 = int_to_ptr.vmem [resolvable:$false] %s758_s0 }
 0x292   : > { %s760_s22 = scalar_lea.vmem %s759_s0, 256  ;;  %p761_p7 = scmp.lt.s32.totalorder %s1054_s16, %s759_s0 }
 0x293   : > { %p756_p13 = pnand %p755_p8, %p950_p12  ;;  %p762_p9 = scmp.lt.s32.totalorder %s760_s22, %s754_s12 }
 0x295   : > { %p757_p3 = pneg %p756_p13  ;;  %p763_p11 = por %p762_p9, %p761_p7 }
 0x297   : > { %p764_p5 = pnand %p763_p11, %p757_p3 }
 0x309   : > { %v350_v46 = vpop.xlane.xlu1 %349 }
 0x30a   : > { %v351_v47 = vrot.slane %v350_v46, 4 }
 0x30c   : > { %v352_v48 = vadd.f32 %v351_v47, %v350_v46 }
 0x30d   : > { %v364_v49 = vpop.xlane.xlu1 %363 }
 0x30e   : > { %v353_v50 = vrot.slane %v352_v48, 2  ;;  %v365_v51 = vrot.slane %v364_v49, 4 }
 0x310   : > { %v366_v52 = vadd.f32 %v365_v51, %v364_v49  ;;  %v354_v53 = vadd.f32 %v353_v50, %v352_v48 }
 0x312   : > { %v367_v54 = vrot.slane %v366_v52, 2  ;;  %v355_v55 = vrot.slane %v354_v53, 1 }
 0x314   : > { %v368_v56 = vadd.f32 %v367_v54, %v366_v52  ;;  %v356_v57 = vadd.f32 %v355_v55, %v354_v53 }
 0x316   : > { %589 = vpush %v356_v57  ;;  %v369_v58 = vrot.slane %v368_v56, 1 }
 0x318   : > { %v370_v59 = vadd.f32 %v369_v58, %v368_v56 }
 0x31a   : > { %591 = vpush %v370_v59 }
 0x347   : > { %s590_s10 = spop %589 }
 0x34b   : > { %s592_s13 = spop %591 }
 0x34c   : > { %s392_s14 = smul.f32 2.0, %s592_s13 }
 0x34e   : > { %s393_s5 = ssub.f32 %s590_s10, %s392_s14 }
 0x350   : > { %v394_v60 = vstv %s393_s5 }
 0x351   : > { %395 = vst [vmem:[%s239_s15] sm:$0xff] %v394_v60 }
 0x352   : > { %767 = shalt.err (!%p764_p5)
}
 0x353   : > { %s768_s8 = scalar_lea.hbm %s1052_s27, 128  ;;  %s772_s9 = scalar_lea.hbm %s1099_s4, 512 }
 0x354   : > { %p769_p0 = scmp.ne.s32.totalorder %s1052_s27, %s768_s8  ;;  %p773_p1 = scmp.lt.u32.totalorder %s1052_s27, %s1099_s4 }
 0x355   : > { %p774_p4 = scmp.lt.u32.totalorder %s772_s9, %s768_s8  ;;  %p776_p8 = scmp.lt.u32.totalorder %s768_s8, %s1052_s27 }
 0x356   : > { %p770_p10 = pnand %p769_p0, %p950_p12 }
 0x357   : > { %p775_p6 = por %p774_p4, %p773_p1 }
 0x358   : > { %p771_p2 = pneg %p770_p10 }
 0x359   : > { %p777_p13 = por %p776_p8, %p775_p6 }
 0x35b   : > { %p778_p3 = pnand %p777_p13, %p771_p2 }
 0x35d   : > { %781 = shalt.err (!%p778_p3)
}
 0x35e   : > { %600 = dma.vmem_to_hbm [thread:$0]  (%p950_p12), %s1054_s16, 128, %s1052_s27, %s402_s11  }
 0x35f PF: > { %p621_p7 = scmp.ge.s32.totalorder %s828_s20, 2  ;;  %s440_s13 = sand.u32 1, %s816_s17  }
 0x360   : > { %p1114_p9 = scmp.ne.s32.totalorder %s1104_s23, 0  ;;  %s441_s14 = scalar_lea.sflag [#allocation5], %s440_s13 }
 0x362   : > { %p612_p11 = pnand %p621_p7, %p1114_p9 }
 0x364   : > { %807 = dma.done.wait (!%p612_p11), %s441_s14, 128  }
 0x365   : > { %809 = vsyncadd (!%p612_p11), %s441_s14, 4294967168  ;;  %s450_s15 = scalar_lea.sflag [#allocation10], %s440_s13 }
 0x366   : > { %811 = dma.done.wait (!%p612_p11), %s450_s15, 128  }
 0x367   : > { %813 = vsyncadd (!%p612_p11), %s450_s15, 4294967168  ;;  %p23_p12 = scmp.ge.s32.totalorder %s920_s28, 6   ;;  %s1115_s17 = smov %s820_s18 }
 0x368   : > { %s1116_s18 = smov %s824_s19  ;;  %s1117_s19 = smov %s946_s21 }
 0x369   : > { %s1118_s20 = smov %s920_s28  ;;  %25 = sbr.rel (!%p23_p12) target bundleno = 10 (0xa), region = 99 }
 0x370   :  { %455 = vsyncpa [#allocation4], 1 }
 0x371   :  { %457 = vsyncpa [#allocation4 + $0x1], 1 }
 0x372   :  { %458 = vsyncpa [#allocation7], 1 }
 0x373   :  { %459 = vsyncpa [#allocation5], 1 }
 0x374   :  { %461 = vsyncpa [#allocation5 + $0x1], 1 }
 0x375   :  { %462 = vsyncpa [#allocation10], 1 }
 0x376   :  { %464 = vsyncpa [#allocation10 + $0x1], 1 }

</bundles_post_ra>
